<compile_context>
chip_gen: v6e
topology: v6e:2x2x1
jax: 0.10.0
libtpu: 0.0.40
codegen_flags: <defaults>
</compile_context>

<pallas_src>
import math
from functools import partial

import jax
import jax.numpy as jnp
from jax.experimental import pallas as pl
from jax.experimental.pallas import tpu as pltpu

LN_EPS = 1e-5  # PyTorch nn.LayerNorm default


def mhca_kernel(x_ref, xe_ref,
                ln_w_ref, ln_b_ref,
                wq_ref, bq_ref, wk_ref, bk_ref, wv_ref, bv_ref,
                wo_ref, bo_ref,
                out_ref, att_ref,
                xn_ref, acc_ref,
                *, head_dim):
    """One (batch, query-tile, head) grid step.

    x_ref  : (1, tq, D)    xe_ref : (1, Tk, D)
    ln_*   : (1, D)
    wq/wk/wv/wo_ref : (1, dh, D) per-head weight slab (lane-dense D)
    bq/bk/bv_ref    : (1, 1, dh) per-head bias,  bo_ref : (1, D)
    out_ref: (1, tq, D)    att_ref: (1, 1, tq, Tk)
    xn_ref : (tq, D) scratch (cached LayerNorm output, matmul dtype)
    acc_ref: (tq, D) f32 scratch (output-projection accumulator over heads)
    """
    h = pl.program_id(2)
    mm_dtype = wq_ref.dtype                      # matmul operand dtype (f32 or bf16)
    scale = 1.0 / math.sqrt(head_dim)

    # ---- LayerNorm once per query tile (head == 0), cached across heads ----
    @pl.when(h == 0)
    def _():
        xv = x_ref[0]                            # (tq, D) f32
        mean = jnp.mean(xv, axis=-1, keepdims=True)
        var = jnp.mean((xv - mean) * (xv - mean), axis=-1, keepdims=True)
        xn = (xv - mean) * jax.lax.rsqrt(var + LN_EPS)
        xn = xn * ln_w_ref[...] + ln_b_ref[...]
        xn_ref[...] = xn.astype(xn_ref.dtype)
        acc_ref[...] = jnp.zeros_like(acc_ref)

    xn = xn_ref[...]                             # (tq, D) mm_dtype
    xe = xe_ref[0].astype(mm_dtype)              # (Tk, D)

    contract_last = (((1,), (1,)), ((), ()))     # contract lane-dense D / dh axes
    # ---- per-head Q/K/V projections (MXU, f32 accumulation) ----
    q = jax.lax.dot_general(xn, wq_ref[0], contract_last,
                            preferred_element_type=jnp.float32) + bq_ref[0]   # (tq, dh)
    k = jax.lax.dot_general(xe, wk_ref[0], contract_last,
                            preferred_element_type=jnp.float32) + bk_ref[0]   # (Tk, dh)
    v = jax.lax.dot_general(xe, wv_ref[0], contract_last,
                            preferred_element_type=jnp.float32) + bv_ref[0]   # (Tk, dh)

    # ---- scores: contract dh of Q and K directly (no K^T materialization) ----
    s = jax.lax.dot_general(q.astype(mm_dtype), k.astype(mm_dtype), contract_last,
                            preferred_element_type=jnp.float32) * scale       # (tq, Tk)
    s = s - jnp.max(s, axis=-1, keepdims=True)
    p = jnp.exp(s)
    p = p * pl.reciprocal(jnp.sum(p, axis=-1, keepdims=True), approx=True)

    att_ref[0, 0] = p.astype(att_ref.dtype)

    # ---- attention-weighted values, then accumulate this head's output projection ----
    o = jax.lax.dot_general(p.astype(mm_dtype), v.astype(mm_dtype),
                            (((1,), (0,)), ((), ())),
                            preferred_element_type=jnp.float32)               # (tq, dh)
    acc_ref[...] += jax.lax.dot_general(o.astype(mm_dtype), wo_ref[0],
                                        (((1,), (0,)), ((), ())),
                                        preferred_element_type=jnp.float32)   # (tq, D)

    @pl.when(h == pl.num_programs(2) - 1)
    def _():
        out_ref[0] = (acc_ref[...] + bo_ref[...]).astype(out_ref.dtype)

    # TODO(synk): optional mask_enc (additive -1e9 mask) and train-mode dropout not wired in;
    # this matches the PyTorch module with mask_enc=None in eval mode.


def mhca_forward(x, x_enc, params, num_heads, *, tq_tile=None, mm_dtype=jnp.float32):
    """params = (ln_w, ln_b, wq_t, bq, wk_t, bk, wv_t, bv, wo_t, bo) in 'math' layout:
    y = x @ W + b, with 1-D params shaped (1, D).  Weights are re-packed per head and
    cast to `mm_dtype` (bf16 recommended) for the MXU; biases / LN stay f32."""
    ln_w, ln_b, wq_t, bq, wk_t, bk, wv_t, bv, wo_t, bo = params
    B, Tq, D = x.shape
    Tk = x_enc.shape[1]
    assert D % num_heads == 0
    dh = D // num_heads

    if tq_tile is None:
        tq_tile = Tq
        for cand in (256, 128, 64, 32, 16, 8):
            if Tq % cand == 0:
                tq_tile = cand
                break
    n_tq = Tq // tq_tile

    # Per-head weight slabs, lane-dense on D.
    # q[:, h*dh+j] = sum_d xn[:, d] * wq_t[d, h*dh+j]  ->  wq_heads[h, j, d] = wq_t[d, h*dh+j]
    def split_in(w):   # (D, D) -> (H, dh, D), contract last dims against activations
        return jnp.transpose(w.reshape(D, num_heads, dh), (1, 2, 0)).astype(mm_dtype)

    wq_h = split_in(wq_t)
    wk_h = split_in(wk_t)
    wv_h = split_in(wv_t)
    wo_h = wo_t.reshape(num_heads, dh, D).astype(mm_dtype)      # out += o_h @ wo_h[h]

    bq_h = bq.reshape(num_heads, 1, dh).astype(jnp.float32)
    bk_h = bk.reshape(num_heads, 1, dh).astype(jnp.float32)
    bv_h = bv.reshape(num_heads, 1, dh).astype(jnp.float32)

    kernel = partial(mhca_kernel, head_dim=dh)

    x_spec = pl.BlockSpec((1, tq_tile, D), lambda b, t, h: (b, t, 0))
    xe_spec = pl.BlockSpec((1, Tk, D), lambda b, t, h: (b, 0, 0))
    vec_spec = pl.BlockSpec((1, D), lambda b, t, h: (0, 0))
    w_spec = pl.BlockSpec((1, dh, D), lambda b, t, h: (h, 0, 0))
    bias_spec = pl.BlockSpec((1, 1, dh), lambda b, t, h: (h, 0, 0))

    out, att = pl.pallas_call(
        kernel,
        out_shape=(
            jax.ShapeDtypeStruct((B, Tq, D), jnp.float32),
            jax.ShapeDtypeStruct((B, num_heads, Tq, Tk), jnp.float32),
        ),
        grid_spec=pltpu.PrefetchScalarGridSpec(
            num_scalar_prefetch=0,
            grid=(B, n_tq, num_heads),
            in_specs=[
                x_spec, xe_spec,
                vec_spec, vec_spec,              # LayerNorm weight / bias
                w_spec, bias_spec,               # Q
                w_spec, bias_spec,               # K
                w_spec, bias_spec,               # V
                w_spec, vec_spec,                # output projection / bias
            ],
            out_specs=(
                pl.BlockSpec((1, tq_tile, D), lambda b, t, h: (b, t, 0)),
                pl.BlockSpec((1, 1, tq_tile, Tk), lambda b, t, h: (b, h, t, 0)),
            ),
            scratch_shapes=[
                pltpu.VMEM((tq_tile, D), mm_dtype),      # cached LayerNorm(x) tile
                pltpu.VMEM((tq_tile, D), jnp.float32),   # output accumulator over heads
            ],
        ),
        compiler_params=pltpu.CompilerParams(
            dimension_semantics=("parallel", "parallel", "arbitrary")),
    )(x, x_enc, ln_w, ln_b, wq_h, bq_h, wk_h, bk_h, wv_h, bv_h, wo_h, bo)
    return out, att


def ref_forward(x, x_enc, params, num_heads):
    """Pure-JAX reference mirroring the PyTorch module (eval mode, no mask)."""
    ln_w, ln_b, wq, bq, wk, bk, wv, bv, wo, bo = params
    B, Tq, D = x.shape
    Tk = x_enc.shape[1]
    dh = D // num_heads

    mean = x.mean(-1, keepdims=True)
    var = ((x - mean) ** 2).mean(-1, keepdims=True)
    xn = (x - mean) / jnp.sqrt(var + LN_EPS) * ln_w + ln_b

    q = (xn @ wq + bq).reshape(B, Tq, num_heads, dh).transpose(0, 2, 1, 3)
    k = (x_enc @ wk + bk).reshape(B, Tk, num_heads, dh).transpose(0, 2, 1, 3)
    v = (x_enc @ wv + bv).reshape(B, Tk, num_heads, dh).transpose(0, 2, 1, 3)

    s = jnp.einsum("bhqd,bhkd->bhqk", q, k) / dh ** 0.5
    att = jax.nn.softmax(s, axis=-1)
    o = jnp.einsum("bhqk,bhkd->bhqd", att, v).transpose(0, 2, 1, 3).reshape(B, Tq, D)
    return o @ wo + bo, att


if __name__ == "__main__":
    B, Tq, Tk, D, H = 2, 8, 16, 32, 4

    key = jax.random.PRNGKey(0)
    ks = jax.random.split(key, 12)

    x = jax.random.normal(ks[0], (B, Tq, D), jnp.float32)
    x_enc = jax.random.normal(ks[1], (B, Tk, D), jnp.float32)

    # Deterministic parameter init (shapes per nn.LayerNorm(D) + 4x nn.Linear(D, D)).
    scale = 1.0 / (D ** 0.5)
    ln_w = 1.0 + 0.1 * jax.random.normal(ks[2], (1, D), jnp.float32)
    ln_b = 0.1 * jax.random.normal(ks[3], (1, D), jnp.float32)
    wq_t = scale * jax.random.normal(ks[4], (D, D), jnp.float32)   # already W.T layout
    bq = 0.1 * jax.random.normal(ks[5], (1, D), jnp.float32)
    wk_t = scale * jax.random.normal(ks[6], (D, D), jnp.float32)
    bk = 0.1 * jax.random.normal(ks[7], (1, D), jnp.float32)
    wv_t = scale * jax.random.normal(ks[8], (D, D), jnp.float32)
    bv = 0.1 * jax.random.normal(ks[9], (1, D), jnp.float32)
    wo_t = scale * jax.random.normal(ks[10], (D, D), jnp.float32)
    bo = 0.1 * jax.random.normal(ks[11], (1, D), jnp.float32)

    params = (ln_w, ln_b, wq_t, bq, wk_t, bk, wv_t, bv, wo_t, bo)

    out_ref, att_ref = ref_forward(x, x_enc, params, H)

    # --- f32 MXU path: tight parity with the PyTorch-equivalent reference ---
    out32, att32 = mhca_forward(x, x_enc, params, H, mm_dtype=jnp.float32)
    out32 = jax.block_until_ready(out32)
    att32 = jax.block_until_ready(att32)
    assert out32.shape == (B, Tq, D) and att32.shape == (B, H, Tq, Tk)
    assert jnp.allclose(out32, out_ref, atol=1e-2, rtol=1e-2)
    assert jnp.allclose(att32, att_ref, atol=2e-3)

    # --- bf16 MXU path (recommended for perf): f32 accumulation, looser tolerance ---
    out16, att16 = mhca_forward(x, x_enc, params, H, mm_dtype=jnp.bfloat16)
    out16 = jax.block_until_ready(out16)
    att16 = jax.block_until_ready(att16)
    assert jnp.allclose(out16, out_ref, atol=8e-2, rtol=8e-2)
    assert jnp.allclose(att16, att_ref, atol=3e-2)

    print("KERNEL_OK")
</pallas_src>

<mosaic_0001>
module attributes {stable_mosaic.version = 11 : i64} {
  func.func @mhca_kernel(%arg0: i32, %arg1: i32, %arg2: i32, %arg3: memref<1x8x32xf32, #tpu.memory_space<vmem>>, %arg4: memref<1x16x32xf32, #tpu.memory_space<vmem>>, %arg5: memref<1x32xf32, #tpu.memory_space<vmem>>, %arg6: memref<1x32xf32, #tpu.memory_space<vmem>>, %arg7: memref<1x8x32xf32, #tpu.memory_space<vmem>>, %arg8: memref<1x1x8xf32, #tpu.memory_space<vmem>>, %arg9: memref<1x8x32xf32, #tpu.memory_space<vmem>>, %arg10: memref<1x1x8xf32, #tpu.memory_space<vmem>>, %arg11: memref<1x8x32xf32, #tpu.memory_space<vmem>>, %arg12: memref<1x1x8xf32, #tpu.memory_space<vmem>>, %arg13: memref<1x8x32xf32, #tpu.memory_space<vmem>>, %arg14: memref<1x32xf32, #tpu.memory_space<vmem>>, %arg15: memref<1x8x32xf32, #tpu.memory_space<vmem>>, %arg16: memref<1x1x8x16xf32, #tpu.memory_space<vmem>>, %arg17: memref<8x32xf32, #tpu.memory_space<vmem>>, %arg18: memref<8x32xf32, #tpu.memory_space<vmem>>) attributes {dimension_semantics = [#tpu.dimension_semantics<parallel>, #tpu.dimension_semantics<parallel>, #tpu.dimension_semantics<arbitrary>], iteration_bounds = array<i64: 2, 1, 4>, scalar_prefetch = 0 : i64, scratch_operands = 2 : i64, tpu.core_type = #tpu.core_type<tc>, window_params = [{transform_indices = @transform_0, window_bounds = array<i64: 1, 8, 32>}, {transform_indices = @transform_1, window_bounds = array<i64: 1, 16, 32>}, {pipeline_mode = #tpu.pipeline_mode<synchronous>, transform_indices = @transform_2, window_bounds = array<i64: 1, 32>}, {pipeline_mode = #tpu.pipeline_mode<synchronous>, transform_indices = @transform_3, window_bounds = array<i64: 1, 32>}, {transform_indices = @transform_4, window_bounds = array<i64: 1, 8, 32>}, {transform_indices = @transform_5, window_bounds = array<i64: 1, 1, 8>}, {transform_indices = @transform_6, window_bounds = array<i64: 1, 8, 32>}, {transform_indices = @transform_7, window_bounds = array<i64: 1, 1, 8>}, {transform_indices = @transform_8, window_bounds = array<i64: 1, 8, 32>}, {transform_indices = @transform_9, window_bounds = array<i64: 1, 1, 8>}, {transform_indices = @transform_10, window_bounds = array<i64: 1, 8, 32>}, {pipeline_mode = #tpu.pipeline_mode<synchronous>, transform_indices = @transform_11, window_bounds = array<i64: 1, 32>}, {transform_indices = @transform_12, window_bounds = array<i64: 1, 8, 32>}, {transform_indices = @transform_13, window_bounds = array<i64: 1, 1, 8, 16>}]} {
    %c0_i32 = arith.constant 0 : i32
    %0 = arith.cmpi eq, %arg2, %c0_i32 : i32
    %1 = arith.extui %0 : i1 to i32
    %c0_i32_0 = arith.constant 0 : i32
    %2 = arith.cmpi ne, %1, %c0_i32_0 : i32
    scf.if %2 {
      %c0_43 = arith.constant 0 : index
      %c0_44 = arith.constant 0 : index
      %c0_45 = arith.constant 0 : index
      %53 = vector.load %arg3[%c0_43, %c0_44, %c0_45] : memref<1x8x32xf32, #tpu.memory_space<vmem>>, vector<1x8x32xf32>
      %54 = vector.shape_cast %53 : vector<1x8x32xf32> to vector<8x32xf32>
      %cst_46 = arith.constant dense<0.000000e+00> : vector<8xf32>
      %55 = vector.multi_reduction <add>, %54, %cst_46 [1] : vector<8x32xf32> to vector<8xf32>
      %56 = vector.shape_cast %55 : vector<8xf32> to vector<8x1xf32>
      %cst_47 = arith.constant 3.200000e+01 : f32
      %57 = vector.broadcast %cst_47 : f32 to vector<8x1xf32>
      %58 = arith.divf %56, %57 : vector<8x1xf32>
      %59 = vector.broadcast %58 : vector<8x1xf32> to vector<8x32xf32>
      %60 = arith.subf %54, %59 : vector<8x32xf32>
      %61 = vector.broadcast %58 : vector<8x1xf32> to vector<8x32xf32>
      %62 = arith.subf %54, %61 : vector<8x32xf32>
      %63 = arith.mulf %60, %62 : vector<8x32xf32>
      %cst_48 = arith.constant dense<0.000000e+00> : vector<8xf32>
      %64 = vector.multi_reduction <add>, %63, %cst_48 [1] : vector<8x32xf32> to vector<8xf32>
      %65 = vector.shape_cast %64 : vector<8xf32> to vector<8x1xf32>
      %cst_49 = arith.constant 3.200000e+01 : f32
      %66 = vector.broadcast %cst_49 : f32 to vector<8x1xf32>
      %67 = arith.divf %65, %66 : vector<8x1xf32>
      %68 = vector.broadcast %58 : vector<8x1xf32> to vector<8x32xf32>
      %69 = arith.subf %54, %68 : vector<8x32xf32>
      %cst_50 = arith.constant 9.99999974E-6 : f32
      %70 = vector.broadcast %cst_50 : f32 to vector<8x1xf32>
      %71 = arith.addf %67, %70 : vector<8x1xf32>
      %72 = math.rsqrt %71 : vector<8x1xf32>
      %73 = vector.broadcast %72 : vector<8x1xf32> to vector<8x32xf32>
      %74 = arith.mulf %69, %73 : vector<8x32xf32>
      %c0_51 = arith.constant 0 : index
      %c0_52 = arith.constant 0 : index
      %75 = vector.load %arg5[%c0_51, %c0_52] : memref<1x32xf32, #tpu.memory_space<vmem>>, vector<1x32xf32>
      %76 = vector.broadcast %75 : vector<1x32xf32> to vector<8x32xf32>
      %77 = arith.mulf %74, %76 : vector<8x32xf32>
      %c0_53 = arith.constant 0 : index
      %c0_54 = arith.constant 0 : index
      %78 = vector.load %arg6[%c0_53, %c0_54] : memref<1x32xf32, #tpu.memory_space<vmem>>, vector<1x32xf32>
      %79 = vector.broadcast %78 : vector<1x32xf32> to vector<8x32xf32>
      %80 = arith.addf %77, %79 : vector<8x32xf32>
      %c0_55 = arith.constant 0 : index
      %c0_56 = arith.constant 0 : index
      %81 = vector.load %arg17[%c0_55, %c0_56] : memref<8x32xf32, #tpu.memory_space<vmem>>, vector<8x32xf32>
      tpu.vector_store %arg17[%c0_55, %c0_56], %80 {strides = array<i32>} : memref<8x32xf32, #tpu.memory_space<vmem>>, vector<8x32xf32>,
      %cst_57 = arith.constant 0.000000e+00 : f32
      %82 = vector.broadcast %cst_57 : f32 to vector<8x32xf32>
      %c0_58 = arith.constant 0 : index
      %c0_59 = arith.constant 0 : index
      %83 = vector.load %arg18[%c0_58, %c0_59] : memref<8x32xf32, #tpu.memory_space<vmem>>, vector<8x32xf32>
      tpu.vector_store %arg18[%c0_58, %c0_59], %82 {strides = array<i32>} : memref<8x32xf32, #tpu.memory_space<vmem>>, vector<8x32xf32>,
    } else {
    }
    %c0 = arith.constant 0 : index
    %c0_1 = arith.constant 0 : index
    %3 = vector.load %arg17[%c0, %c0_1] : memref<8x32xf32, #tpu.memory_space<vmem>>, vector<8x32xf32>
    %c0_2 = arith.constant 0 : index
    %c0_3 = arith.constant 0 : index
    %c0_4 = arith.constant 0 : index
    %4 = vector.load %arg4[%c0_2, %c0_3, %c0_4] : memref<1x16x32xf32, #tpu.memory_space<vmem>>, vector<1x16x32xf32>
    %5 = vector.shape_cast %4 : vector<1x16x32xf32> to vector<16x32xf32>
    %c0_5 = arith.constant 0 : index
    %c0_6 = arith.constant 0 : index
    %c0_7 = arith.constant 0 : index
    %6 = vector.load %arg7[%c0_5, %c0_6, %c0_7] : memref<1x8x32xf32, #tpu.memory_space<vmem>>, vector<1x8x32xf32>
    %7 = vector.shape_cast %6 : vector<1x8x32xf32> to vector<8x32xf32>
    %cst = arith.constant dense<0.000000e+00> : vector<8x8xf32>
    %8 = tpu.matmul %3, %7, %cst {dimension_numbers = #tpu.dot_dimension_numbers<[1], [1], [0], [0], [0, 0, 1, 0], [], []>} : vector<8x32xf32>, vector<8x32xf32>, vector<8x8xf32> -> vector<8x8xf32>
    %c0_8 = arith.constant 0 : index
    %c0_9 = arith.constant 0 : index
    %c0_10 = arith.constant 0 : index
    %9 = vector.load %arg8[%c0_8, %c0_9, %c0_10] : memref<1x1x8xf32, #tpu.memory_space<vmem>>, vector<1x1x8xf32>
    %10 = vector.shape_cast %9 : vector<1x1x8xf32> to vector<1x8xf32>
    %11 = vector.broadcast %10 : vector<1x8xf32> to vector<8x8xf32>
    %12 = arith.addf %8, %11 : vector<8x8xf32>
    %c0_11 = arith.constant 0 : index
    %c0_12 = arith.constant 0 : index
    %c0_13 = arith.constant 0 : index
    %13 = vector.load %arg9[%c0_11, %c0_12, %c0_13] : memref<1x8x32xf32, #tpu.memory_space<vmem>>, vector<1x8x32xf32>
    %14 = vector.shape_cast %13 : vector<1x8x32xf32> to vector<8x32xf32>
    %cst_14 = arith.constant dense<0.000000e+00> : vector<16x8xf32>
    %15 = tpu.matmul %5, %14, %cst_14 {dimension_numbers = #tpu.dot_dimension_numbers<[1], [1], [0], [0], [0, 0, 1, 0], [], []>} : vector<16x32xf32>, vector<8x32xf32>, vector<16x8xf32> -> vector<16x8xf32>
    %c0_15 = arith.constant 0 : index
    %c0_16 = arith.constant 0 : index
    %c0_17 = arith.constant 0 : index
    %16 = vector.load %arg10[%c0_15, %c0_16, %c0_17] : memref<1x1x8xf32, #tpu.memory_space<vmem>>, vector<1x1x8xf32>
    %17 = vector.shape_cast %16 : vector<1x1x8xf32> to vector<1x8xf32>
    %18 = vector.broadcast %17 : vector<1x8xf32> to vector<16x8xf32>
    %19 = arith.addf %15, %18 : vector<16x8xf32>
    %c0_18 = arith.constant 0 : index
    %c0_19 = arith.constant 0 : index
    %c0_20 = arith.constant 0 : index
    %20 = vector.load %arg11[%c0_18, %c0_19, %c0_20] : memref<1x8x32xf32, #tpu.memory_space<vmem>>, vector<1x8x32xf32>
    %21 = vector.shape_cast %20 : vector<1x8x32xf32> to vector<8x32xf32>
    %cst_21 = arith.constant dense<0.000000e+00> : vector<16x8xf32>
    %22 = tpu.matmul %5, %21, %cst_21 {dimension_numbers = #tpu.dot_dimension_numbers<[1], [1], [0], [0], [0, 0, 1, 0], [], []>} : vector<16x32xf32>, vector<8x32xf32>, vector<16x8xf32> -> vector<16x8xf32>
    %c0_22 = arith.constant 0 : index
    %c0_23 = arith.constant 0 : index
    %c0_24 = arith.constant 0 : index
    %23 = vector.load %arg12[%c0_22, %c0_23, %c0_24] : memref<1x1x8xf32, #tpu.memory_space<vmem>>, vector<1x1x8xf32>
    %24 = vector.shape_cast %23 : vector<1x1x8xf32> to vector<1x8xf32>
    %25 = vector.broadcast %24 : vector<1x8xf32> to vector<16x8xf32>
    %26 = arith.addf %22, %25 : vector<16x8xf32>
    %cst_25 = arith.constant dense<0.000000e+00> : vector<8x16xf32>
    %27 = tpu.matmul %12, %19, %cst_25 {dimension_numbers = #tpu.dot_dimension_numbers<[1], [1], [0], [0], [0, 0, 1, 0], [], []>} : vector<8x8xf32>, vector<16x8xf32>, vector<8x16xf32> -> vector<8x16xf32>
    %cst_26 = arith.constant 0.353553385 : f32
    %28 = vector.broadcast %cst_26 : f32 to vector<8x16xf32>
    %29 = arith.mulf %27, %28 : vector<8x16xf32>
    %cst_27 = arith.constant dense<0xFF800000> : vector<8xf32>
    %30 = vector.multi_reduction <maximumf>, %29, %cst_27 [1] : vector<8x16xf32> to vector<8xf32>
    %31 = vector.shape_cast %30 : vector<8xf32> to vector<8x1xf32>
    %32 = vector.broadcast %31 : vector<8x1xf32> to vector<8x16xf32>
    %33 = arith.subf %29, %32 : vector<8x16xf32>
    %34 = math.exp %33 : vector<8x16xf32>
    %cst_28 = arith.constant dense<0.000000e+00> : vector<8xf32>
    %35 = vector.multi_reduction <add>, %34, %cst_28 [1] : vector<8x16xf32> to vector<8xf32>
    %36 = vector.shape_cast %35 : vector<8xf32> to vector<8x1xf32>
    %37 = tpu.reciprocal %36 {approx = true} : vector<8x1xf32> -> vector<8x1xf32>
    %38 = vector.broadcast %37 : vector<8x1xf32> to vector<8x16xf32>
    %39 = arith.mulf %34, %38 : vector<8x16xf32>
    %c0_29 = arith.constant 0 : index
    %c0_30 = arith.constant 0 : index
    %c0_31 = arith.constant 0 : index
    %c0_32 = arith.constant 0 : index
    %40 = vector.load %arg16[%c0_29, %c0_30, %c0_31, %c0_32] : memref<1x1x8x16xf32, #tpu.memory_space<vmem>>, vector<1x1x8x16xf32>
    %41 = vector.shape_cast %40 : vector<1x1x8x16xf32> to vector<8x16xf32>
    %42 = vector.shape_cast %39 : vector<8x16xf32> to vector<1x1x8x16xf32>
    tpu.vector_store %arg16[%c0_29, %c0_30, %c0_31, %c0_32], %42 {strides = array<i32>} : memref<1x1x8x16xf32, #tpu.memory_space<vmem>>, vector<1x1x8x16xf32>,
    %cst_33 = arith.constant dense<0.000000e+00> : vector<8x8xf32>
    %43 = tpu.matmul %39, %26, %cst_33 {dimension_numbers = #tpu.dot_dimension_numbers<[1], [0], [0], [1], [0, 0, 1, 1], [], []>} : vector<8x16xf32>, vector<16x8xf32>, vector<8x8xf32> -> vector<8x8xf32>
    %c0_34 = arith.constant 0 : index
    %c0_35 = arith.constant 0 : index
    %44 = vector.load %arg18[%c0_34, %c0_35] : memref<8x32xf32, #tpu.memory_space<vmem>>, vector<8x32xf32>
    %c0_36 = arith.constant 0 : index
    %c0_37 = arith.constant 0 : index
    %c0_38 = arith.constant 0 : index
    %45 = vector.load %arg13[%c0_36, %c0_37, %c0_38] : memref<1x8x32xf32, #tpu.memory_space<vmem>>, vector<1x8x32xf32>
    %46 = vector.shape_cast %45 : vector<1x8x32xf32> to vector<8x32xf32>
    %cst_39 = arith.constant dense<0.000000e+00> : vector<8x32xf32>
    %47 = tpu.matmul %43, %46, %cst_39 {dimension_numbers = #tpu.dot_dimension_numbers<[1], [0], [0], [1], [0, 0, 1, 1], [], []>} : vector<8x8xf32>, vector<8x32xf32>, vector<8x32xf32> -> vector<8x32xf32>
    %48 = arith.addf %44, %47 : vector<8x32xf32>
    %c0_40 = arith.constant 0 : index
    %c0_41 = arith.constant 0 : index
    %49 = vector.load %arg18[%c0_40, %c0_41] : memref<8x32xf32, #tpu.memory_space<vmem>>, vector<8x32xf32>
    tpu.vector_store %arg18[%c0_40, %c0_41], %48 {strides = array<i32>} : memref<8x32xf32, #tpu.memory_space<vmem>>, vector<8x32xf32>,
    %c3_i32 = arith.constant 3 : i32
    %50 = arith.cmpi eq, %arg2, %c3_i32 : i32
    %51 = arith.extui %50 : i1 to i32
    %c0_i32_42 = arith.constant 0 : i32
    %52 = arith.cmpi ne, %51, %c0_i32_42 : i32
    scf.if %52 {
      %c0_43 = arith.constant 0 : index
      %c0_44 = arith.constant 0 : index
      %53 = vector.load %arg18[%c0_43, %c0_44] : memref<8x32xf32, #tpu.memory_space<vmem>>, vector<8x32xf32>
      %c0_45 = arith.constant 0 : index
      %c0_46 = arith.constant 0 : index
      %54 = vector.load %arg14[%c0_45, %c0_46] : memref<1x32xf32, #tpu.memory_space<vmem>>, vector<1x32xf32>
      %55 = vector.broadcast %54 : vector<1x32xf32> to vector<8x32xf32>
      %56 = arith.addf %53, %55 : vector<8x32xf32>
      %c0_47 = arith.constant 0 : index
      %c0_48 = arith.constant 0 : index
      %c0_49 = arith.constant 0 : index
      %57 = vector.load %arg15[%c0_47, %c0_48, %c0_49] : memref<1x8x32xf32, #tpu.memory_space<vmem>>, vector<1x8x32xf32>
      %58 = vector.shape_cast %57 : vector<1x8x32xf32> to vector<8x32xf32>
      %59 = vector.shape_cast %56 : vector<8x32xf32> to vector<1x8x32xf32>
      tpu.vector_store %arg15[%c0_47, %c0_48, %c0_49], %59 {strides = array<i32>} : memref<1x8x32xf32, #tpu.memory_space<vmem>>, vector<1x8x32xf32>,
    } else {
    }
    return
  }
  func.func @transform_0(%arg0: i32, %arg1: i32, %arg2: i32) -> (i32, i32, i32) {
    %c0_i32 = arith.constant 0 : i32
    %c0_i32_0 = arith.constant 0 : i32
    return %arg0, %arg1, %c0_i32 : i32, i32, i32
  }
  func.func @transform_1(%arg0: i32, %arg1: i32, %arg2: i32) -> (i32, i32, i32) {
    %c0_i32 = arith.constant 0 : i32
    %c0_i32_0 = arith.constant 0 : i32
    %c0_i32_1 = arith.constant 0 : i32
    return %arg0, %c0_i32, %c0_i32_0 : i32, i32, i32
  }
  func.func @transform_2(%arg0: i32, %arg1: i32, %arg2: i32) -> (i32, i32) {
    %c0_i32 = arith.constant 0 : i32
    %c0_i32_0 = arith.constant 0 : i32
    %c0_i32_1 = arith.constant 0 : i32
    return %c0_i32, %c0_i32_0 : i32, i32
  }
  func.func @transform_3(%arg0: i32, %arg1: i32, %arg2: i32) -> (i32, i32) {
    %c0_i32 = arith.constant 0 : i32
    %c0_i32_0 = arith.constant 0 : i32
    %c0_i32_1 = arith.constant 0 : i32
    return %c0_i32, %c0_i32_0 : i32, i32
  }
  func.func @transform_4(%arg0: i32, %arg1: i32, %arg2: i32) -> (i32, i32, i32) {
    %c0_i32 = arith.constant 0 : i32
    %c0_i32_0 = arith.constant 0 : i32
    %c0_i32_1 = arith.constant 0 : i32
    return %arg2, %c0_i32, %c0_i32_0 : i32, i32, i32
  }
  func.func @transform_5(%arg0: i32, %arg1: i32, %arg2: i32) -> (i32, i32, i32) {
    %c0_i32 = arith.constant 0 : i32
    %c0_i32_0 = arith.constant 0 : i32
    %c0_i32_1 = arith.constant 0 : i32
    return %arg2, %c0_i32, %c0_i32_0 : i32, i32, i32
  }
  func.func @transform_6(%arg0: i32, %arg1: i32, %arg2: i32) -> (i32, i32, i32) {
    %c0_i32 = arith.constant 0 : i32
    %c0_i32_0 = arith.constant 0 : i32
    %c0_i32_1 = arith.constant 0 : i32
    return %arg2, %c0_i32, %c0_i32_0 : i32, i32, i32
  }
  func.func @transform_7(%arg0: i32, %arg1: i32, %arg2: i32) -> (i32, i32, i32) {
    %c0_i32 = arith.constant 0 : i32
    %c0_i32_0 = arith.constant 0 : i32
    %c0_i32_1 = arith.constant 0 : i32
    return %arg2, %c0_i32, %c0_i32_0 : i32, i32, i32
  }
  func.func @transform_8(%arg0: i32, %arg1: i32, %arg2: i32) -> (i32, i32, i32) {
    %c0_i32 = arith.constant 0 : i32
    %c0_i32_0 = arith.constant 0 : i32
    %c0_i32_1 = arith.constant 0 : i32
    return %arg2, %c0_i32, %c0_i32_0 : i32, i32, i32
  }
  func.func @transform_9(%arg0: i32, %arg1: i32, %arg2: i32) -> (i32, i32, i32) {
    %c0_i32 = arith.constant 0 : i32
    %c0_i32_0 = arith.constant 0 : i32
    %c0_i32_1 = arith.constant 0 : i32
    return %arg2, %c0_i32, %c0_i32_0 : i32, i32, i32
  }
  func.func @transform_10(%arg0: i32, %arg1: i32, %arg2: i32) -> (i32, i32, i32) {
    %c0_i32 = arith.constant 0 : i32
    %c0_i32_0 = arith.constant 0 : i32
    %c0_i32_1 = arith.constant 0 : i32
    return %arg2, %c0_i32, %c0_i32_0 : i32, i32, i32
  }
  func.func @transform_11(%arg0: i32, %arg1: i32, %arg2: i32) -> (i32, i32) {
    %c0_i32 = arith.constant 0 : i32
    %c0_i32_0 = arith.constant 0 : i32
    %c0_i32_1 = arith.constant 0 : i32
    return %c0_i32, %c0_i32_0 : i32, i32
  }
  func.func @transform_12(%arg0: i32, %arg1: i32, %arg2: i32) -> (i32, i32, i32) {
    %c0_i32 = arith.constant 0 : i32
    %c0_i32_0 = arith.constant 0 : i32
    return %arg0, %arg1, %c0_i32 : i32, i32, i32
  }
  func.func @transform_13(%arg0: i32, %arg1: i32, %arg2: i32) -> (i32, i32, i32, i32) {
    %c0_i32 = arith.constant 0 : i32
    %c0_i32_0 = arith.constant 0 : i32
    return %arg0, %arg2, %arg1, %c0_i32 : i32, i32, i32, i32
  }
}

</mosaic_0001>

<bundles_post_ra>
// kernel: tpu_custom_call.1
= control target key start
LH: loop header
LB: loop body
LE: loop exit
PB: predicated region body
PF: predicated region fallthrough
CT: control target
= control target key end

     0   :  { %s2948_s0 = inlined_call_operand.hbm [shape: f32[2,8,32], index: 0, kind: input, shape index: {}]   ;;  %s2949_s1 = inlined_call_operand.hbm [shape: f32[2,16,32], index: 1, kind: input, shape index: {}]   ;;  %s2950_s2 = inlined_call_operand.hbm [shape: f32[1,32], index: 2, kind: input, shape index: {}]   ;;  %s2951_s3 = inlined_call_operand.hbm [shape: f32[1,32], index: 3, kind: input, shape index: {}]   ;;  %s2952_s4 = inlined_call_operand.hbm [shape: f32[4,8,32], index: 4, kind: input, shape index: {}]   ;;  %s2953_s5 = inlined_call_operand.vmem [shape: f32[4,1,8], index: 5, kind: input, shape index: {}]   ;;  %s2954_s6 = inlined_call_operand.hbm [shape: f32[4,8,32], index: 6, kind: input, shape index: {}]   ;;  %s2955_s7 = inlined_call_operand.vmem [shape: f32[4,1,8], index: 7, kind: input, shape index: {}]   ;;  %s2956_s8 = inlined_call_operand.hbm [shape: f32[4,8,32], index: 8, kind: input, shape index: {}]   ;;  %s2957_s9 = inlined_call_operand.vmem [shape: f32[4,1,8], index: 9, kind: input, shape index: {}]   ;;  %s2958_s10 = inlined_call_operand.hbm [shape: f32[4,8,32], index: 10, kind: input, shape index: {}]   ;;  %s2959_s11 = inlined_call_operand.vmem [shape: f32[1,32], index: 11, kind: input, shape index: {}]   ;;  %s2960_s12 = inlined_call_operand.hbm [shape: f32[2,8,32], index: 12, kind: output, shape index: {0}]   ;;  %s2961_s13 = inlined_call_operand.hbm [shape: f32[2,4,8,16], index: 13, kind: output, shape index: {1}]  }
   0x1   :  { %2999 = sst [smem:[#allocation46_spill]] %s2948_s0 }
   0x2   :  { %3000 = sst [smem:[#allocation47_spill]] %s2949_s1 }
   0x3   :  { %3001 = sst [smem:[#allocation48_spill]] %s2950_s2 }
   0x4   :  { %3002 = sst [smem:[#allocation49_spill]] %s2951_s3 }
   0x5   :  { %3003 = sst [smem:[#allocation50_spill]] %s2952_s4 }
   0x6   :  { %3004 = sst [smem:[#allocation51_spill]] %s2953_s5 }
   0x7   :  { %3005 = sst [smem:[#allocation52_spill]] %s2954_s6 }
   0x8   :  { %3006 = sst [smem:[#allocation53_spill]] %s2955_s7 }
   0x9   :  { %3007 = sst [smem:[#allocation54_spill]] %s2956_s8 }
   0xa   :  { %3008 = sst [smem:[#allocation55_spill]] %s2957_s9 }
   0xb   :  { %3009 = sst [smem:[#allocation56_spill]] %s2959_s11 }
   0xc   :  { %3010 = sst [smem:[#allocation57_spill]] %s2960_s12 }
   0xd   :  { %3011 = sst [smem:[#allocation58_spill]] %s2961_s13 }
   0xe   :  { %19 = vsyncpa [#allocation5], 0 }
   0xf   :  { %21 = vsyncpa [#allocation5 + $0x1], 0 }
  0x10   :  { %22 = vsyncpa [#allocation8], 0 }
  0x11   :  { %24 = vsyncpa [#allocation8 + $0x1], 0 }
  0x12   :  { %25 = vsyncpa [#allocation11], 0 }
  0x13   :  { %26 = vsyncpa [#allocation6], 0 }
  0x14   :  { %28 = vsyncpa [#allocation6 + $0x1], 0 }
  0x15   :  { %29 = vsyncpa [#allocation18], 0 }
  0x16   :  { %31 = vsyncpa [#allocation18 + $0x1], 0  ;;  %s2412_s25 = smov 0   ;;  %s2414_s26 = smov 0  }
  0x17   :  { %s2416_s27 = smov 0   ;;  %s2418_s28 = smov 0  }
  0x18   :  { %s2420_s29 = smov 0   ;;  %s2422_s30 = smov 0  }
  0x19   :  { %s2424_s14 = smov 0   ;;  %s2426_s15 = smov 0  }
  0x1a   :  { %s2428_s16 = smov 0   ;;  %s2430_s17 = smov 0  }
  0x1b   :  { %s2432_s18 = smov 0   ;;  %s2434_s19 = smov 0  }
  0x1c   :  { %s2436_s20 = smov 0   ;;  %s2438_s21 = smov 0  }
  0x1d LB: > { %3012 = sst [smem:[#allocation29_spill]] %s2273_s25  ;;  %s2481_s22 = sadd.s32 4294967295, %s2325_s21   ;;  %s2325_s21 = sphi %s2438_s21, %s37_s21   ;;  %s2321_s20 = sphi %s2436_s20, %s3116_s20   ;;  %s2317_s19 = sphi %s2434_s19, %s3108_s19   ;;  %s2313_s18 = sphi %s2432_s18, %s3115_s18   ;;  %s2309_s17 = sphi %s2430_s17, %s3107_s17   ;;  %s2305_s16 = sphi %s2428_s16, %s3114_s16   ;;  %s2301_s15 = sphi %s2426_s15, %s3113_s15   ;;  %s2297_s14 = sphi %s2424_s14, %s3106_s14   ;;  %s2293_s30 = sphi %s2422_s30, %s3112_s30   ;;  %s2289_s29 = sphi %s2420_s29, %s3111_s29   ;;  %s2285_s28 = sphi %s2418_s28, %s3105_s28   ;;  %s2281_s27 = sphi %s2416_s27, %s3110_s27   ;;  %s2277_s26 = sphi %s2414_s26, %s3109_s26   ;;  %s2273_s25 = sphi %s2412_s25, %s3104_s25  }
  0x1e   : > { %3013 = sst [smem:[#allocation30_spill]] %s2277_s26  ;;  %p172_p0 = scmp.ne.s32.totalorder %s2289_s29, %s2285_s28 }
  0x1f   : > { %3014 = sst [smem:[#allocation31_spill]] %s2289_s29  ;;  %p2987_p1 = scmp.eq.s32.totalorder %s2481_s22, 0 }
  0x20   : > { %3015 = sst [smem:[#allocation32_spill]] %s2297_s14  ;;  %p2967_p2 = scmp.eq.s32.totalorder %s2481_s22, 7 }
  0x21   : > { %3016 = sst [smem:[#allocation33_spill]] %s2301_s15  ;;  %p404_p3 = scmp.ne.s32.totalorder %s2281_s27, %s2277_s26 }
  0x22   : > { %3017 = sst [smem:[#allocation34_spill]] %s2309_s17  ;;  %p2491_p4 = por %p172_p0, %p2987_p1 }
  0x23   : > { %3018 = sst [smem:[#allocation35_spill]] %s2313_s18  ;;  %p2499_p6 = por %p404_p3, %p2967_p2 }
  0x24   : > { %3019 = sst [smem:[#allocation36_spill]] %s2317_s19  ;;  %p1608_p7 = scmp.ge.s32.totalorder %s2325_s21, 1 }
  0x25   : > { %3020 = sst [smem:[#allocation37_spill]] %s2325_s21  ;;  %p418_p8 = scmp.lt.s32.totalorder %s2325_s21, 9 }
  0x26   : > { %3021 = sst [smem:[#allocation38_spill]] %s2481_s22  ;;  %s2327_s28 = smov [#allocation9]  }
  0x27   : > { %s3022_s24 = scalar_select %p2491_p4, 1, 0 }
  0x28   : > { %s3024_s13 = scalar_select %p2499_p6, 1, 0 }
  0x29   : > { %3023 = sst [smem:[#allocation39_spill]] %s3022_s24  ;;  %p2505_p9 = pnand %p1608_p7, %p418_p8 }
  0x2a   : > { %3025 = sst [smem:[#allocation40_spill]] %s3024_s13  ;;  %s431_s23 = sshll.u32 %s2327_s28, 4  ;;  %s432_s23 = int_to_ptr.vmem [resolvable:$true] %s431_s23 }
  0x2b   : > { %p1739_p10 = pneg %p2505_p9  ;;  %s1914_s13 = scalar_lea.vmem %s432_s23, 16 }
  0x2c   : > { %p1915_p13 = scmp.ne.s32.totalorder %s432_s23, %s1914_s13  ;;  %s1921_s11 = scalar_lea.vmem %s432_s23, 32 }
  0x2d   : > { %p2513_p11 = pnand %p1739_p10, %p2987_p1  ;;  %p1922_p7 = scmp.lt.s32.totalorder %s432_s23, %s432_s23 }
  0x2e   : > { %p1923_p8 = scmp.lt.s32.totalorder %s1921_s11, %s1914_s13 }
  0x2f   : > { %p2968_p12 = pneg %p2513_p11 }
  0x30   : > { %p1924_p5 = por %p1923_p8, %p1922_p7 }
  0x31   : > { %p1917_p0 = pnand %p1915_p13, %p2968_p12 }
  0x33   : > { %p1918_p3 = pneg %p1917_p0 }
  0x35   : > { %p1925_p2 = pnand %p1924_p5, %p1918_p3 }
  0x37   : > { %1928 = shalt.err (!%p1925_p2)
}
  0x38   : > { %s3028_s2 = sld [smem:[#allocation48_spill]]  ;;  %s1607_s11 = sadd.s32 4294967294, %s2325_s21  }
  0x39   : > { %p72_p2 = scmp.ne.s32.totalorder %s2305_s16, %s2301_s15  ;;  %p73_p5 = scmp.eq.s32.totalorder %s2325_s21, 0 }
  0x3a   : > { %p78_p10 = scmp.ne.s32.totalorder %s2301_s15, %s2297_s14  ;;  %p166_p13 = scmp.ne.s32.totalorder %s2293_s30, %s2289_s29 }
  0x3b   : > { %p3029_p0 = scmp.eq.s32.totalorder %s2481_s22, 7  ;;  %p2543_p7 = por %p73_p5, %p72_p2 }
  0x3c   : > { %p2549_p8 = por %p2987_p1, %p78_p10  ;;  %p2553_p12 = por %p166_p13, %p73_p5 }
  0x3d   : > { %p2539_p3 = por %p3029_p0, %p72_p2  ;;  %p381_p6 = scmp.eq.s32.totalorder %s1607_s11, 7 }
  0x3e   : > { %1742 = dma.hbm_to_vmem [thread:$0]  (!%p2513_p11), %s3028_s2, 16, %s432_s23, [#allocation8]  }
  0x3f   : > { %s3030_s28 = scalar_select %p2539_p3, 1, 0 }
  0x40   : > { %s3033_s23 = scalar_select %p2549_p8, 1, 0 }
  0x41   : > { %3031 = sst [smem:[#allocation41_spill]] %s3030_s28  ;;  %p2988_p0 = scmp.lt.s32.totalorder %s2325_s21, 8 }
  0x42   : > { %3034 = sst [smem:[#allocation42_spill]] %s3033_s23  ;;  %p2559_p4 = por %p381_p6, %p78_p10 }
  0x43   : > { %p3038_p2 = scmp.ne.s32.totalorder %s2277_s26, %s2273_s25  ;;  %s458_s28 = sand.u32 1, %s2305_s16  }
  0x44   : > { %s3036_s2 = scalar_select %p2559_p4, 1, 0 }
  0x45   : > { %p2566_p3 = por %p3038_p2, %p381_p6  ;;  %s1612_s5 = sshll.u32 %s458_s28, 3 }
  0x46   : > { %3037 = sst [smem:[#allocation43_spill]] %s3036_s2  ;;  %s1613_s17 = sshll.u32 %s2321_s20, 7 }
  0x47   : > { %s3039_s14 = scalar_select %p2566_p3, 1, 0 }
  0x48   : > { %s3041_s0 = sld [smem:[#allocation46_spill]]  ;;  %s460_s15 = scalar_lea.vmem [#allocation4], %s1612_s5 }
  0x49   : > { %3040 = sst [smem:[#allocation44_spill]] %s3039_s14  ;;  %s468_s11 = sshll.u32 %s460_s15, 4  ;;  %s469_s11 = int_to_ptr.vmem [resolvable:$true] %s468_s11 }
  0x4a   : > { %p2579_p5 = pnand %p2988_p0, %p2543_p7  ;;  %s1614_s25 = sshll.u32 %s458_s28, 4 }
  0x4b   : > { %s3043_s14 = sand.u32 1, %s2325_s21   ;;  %s1942_s26 = scalar_lea.vmem %s469_s11, 128 }
  0x4c   : > { %s2585_s2 = scalar_lea.sflag [#allocation5], %s3043_s14  ;;  %p1931_p6 = pneg %p2579_p5 }
  0x4d   : > { %p1943_p10 = scmp.ne.s32.totalorder %s469_s11, %s1942_s26  ;;  %s2328_s5 = smov [#allocation4]  }
  0x4e   : > { %s466_s23 = scalar_lea.hbm %s3041_s0, %s1613_s17  ;;  %s1947_s7 = sshll.u32 %s2328_s5, 4  ;;  %s1948_s7 = int_to_ptr.vmem [resolvable:$false] %s1947_s7 }
  0x4f   : > { %p1945_p13 = pnand %p1943_p10, %p1931_p6  ;;  %s1949_s29 = scalar_lea.vmem %s1948_s7, 256 }
  0x50   : > { %p1950_p7 = scmp.lt.s32.totalorder %s469_s11, %s1948_s7  ;;  %p1951_p1 = scmp.lt.s32.totalorder %s1949_s29, %s1942_s26 }
  0x51   : > { %p1946_p2 = pneg %p1945_p13 }
  0x52   : > { %p1952_p0 = por %p1951_p1, %p1950_p7 }
  0x54   : > { %p1953_p3 = pnand %p1952_p0, %p1946_p2 }
  0x56   : > { %1956 = shalt.err (!%p1953_p3)
}
  0x57   : > { %1749 = dma.hbm_to_vmem [thread:$0]  (!%p2579_p5), %s466_s23, 128, %s469_s11, %s2585_s2  }
  0x58   : > { %p3044_p10 = scmp.lt.s32.totalorder %s2325_s21, 8  ;;  %s479_s15 = scalar_lea.vmem [#allocation7], %s1614_s25 }
  0x59   : > { %s486_s26 = sshll.u32 %s479_s15, 4  ;;  %s1664_s17 = sshll.u32 %s2321_s20, 8  ;;  %s487_s26 = int_to_ptr.vmem [resolvable:$true] %s486_s26 }
  0x5a   : > { %p2599_p13 = pnand %p3044_p10, %p2553_p12  ;;  %s3046_s1 = sld [smem:[#allocation47_spill]] }
  0x5b   : > { %s3047_s7 = sand.u32 1, %s2325_s21   ;;  %s1970_s0 = scalar_lea.vmem %s487_s26, 256 }
  0x5c   : > { %s2609_s29 = scalar_lea.sflag [#allocation8], %s3047_s7  ;;  %p1971_p1 = scmp.ne.s32.totalorder %s487_s26, %s1970_s0 }
  0x5d   : > { %s2329_s13 = smov [#allocation7]  }
  0x5e   : > { %p1973_p3 = pnand %p1971_p1, %p1931_p6  ;;  %s1975_s23 = sshll.u32 %s2329_s13, 4  ;;  %s1976_s23 = int_to_ptr.vmem [resolvable:$false] %s1975_s23 }
  0x5f   : > { %s1977_s25 = scalar_lea.vmem %s1976_s23, 512  ;;  %p1978_p0 = scmp.lt.s32.totalorder %s487_s26, %s1976_s23 }
  0x60   : > { %s485_s5 = scalar_lea.hbm %s3046_s1, %s1664_s17  ;;  %p1974_p12 = pneg %p1973_p3 }
  0x61   : > { %p1979_p2 = scmp.lt.s32.totalorder %s1977_s25, %s1970_s0 }
  0x63   : > { %p1980_p7 = por %p1979_p2, %p1978_p0 }
  0x65   : > { %p1981_p10 = pnand %p1980_p7, %p1974_p12 }
  0x67   : > { %1984 = shalt.err (!%p1981_p10)
}
  0x68   : > { %s2330_s11 = smov 128   ;;  %s2331_s15 = smov 8  }
  0x69   : > { %1752 = dma.hbm_to_vmem [thread:$0]  (!%p2579_p5), %s485_s5, 256, %s487_s26, %s2609_s29, %s2330_s11, %s2330_s11, %s2331_s15  }
  0x6a   : > { %s159_s17 = sadd.s32 1, %s2293_s30  ;;  %s49_s0 = sadd.s32 1, %s2317_s19 }
  0x6b   : > { %s498_s24 = sand.u32 1, %s2293_s30   ;;  %p50_p6 = scmp.ge.s32.totalorder %s49_s0, 4 }
  0x6c   : > { %s2620_s28 = sshll.u32 %s498_s24, 3  ;;  %s2623_s7 = sshll.u32 %s2317_s19, 7 }
  0x6d   : > { %s3118_s0 = smov (%p50_p6, %s49_s0), 0  ;;  %s3049_s13 = sadd.s32 1, %s2321_s20 }
  0x6e   : > { %3048 = sst [smem:[#allocation45_spill]] %s3118_s0  ;;  %s3120_s13 = smov (!%p50_p6, %s3049_s13), %s2321_s20 }
  0x6f   : > { %s156_s9 = ssub.s32 %s2317_s19, %s3118_s0  ;;  %s3050_s4 = sld [smem:[#allocation50_spill]] }
  0x70   : > { %p58_p5 = scmp.ge.s32.totalorder %s3120_s13, 2  ;;  %p157_p1 = scmp.eq.s32.totalorder %s156_s9, 0 }
  0x71   : > { %s500_s25 = scalar_lea.vmem [#allocation12], %s2620_s28  ;;  %s3051_s6 = sld [smem:[#allocation52_spill]] }
  0x72   : > { %s507_s11 = sshll.u32 %s500_s25, 4  ;;  %s3122_s13 = smov (%p58_p5, %s3120_s13), 0  ;;  %s508_s11 = int_to_ptr.vmem [resolvable:$true] %s507_s11 }
  0x73   : > { %s2640_s15 = scalar_select %p157_p1, %s2293_s30, %s159_s17  }
  0x74   : > { %s60_s24 = ssub.s32 %s2321_s20, %s3122_s13  ;;  %s3052_s5 = sadd.s32 1, %s2305_s16 }
  0x75   : > { %p63_p3 = scmp.eq.s32.totalorder %s60_s24, 0  ;;  %s389_s1 = sor.u32 %s156_s9, %s60_s24 }
  0x76   : > { %p392_p12 = scmp.eq.s32.totalorder %s389_s1, 0  ;;  %s3053_s21 = sadd.s32 1, %s2281_s27 }
  0x77   : > { %s2651_s23 = scalar_select %p63_p3, %s2305_s16, %s3052_s5  }
  0x78   : > { %s2656_s22 = scalar_select %p392_p12, %s2281_s27, %s3053_s21  }
  0x79   : > { %p2995_p0 = pneg %p2599_p13  ;;  %s1998_s25 = scalar_lea.vmem %s508_s11, 128 }
  0x7a   : > { %p1999_p2 = scmp.ne.s32.totalorder %s508_s11, %s1998_s25  ;;  %s2332_s17 = smov [#allocation12]  }
  0x7b   : > { %s2003_s1 = sshll.u32 %s2332_s17, 4  ;;  %s2004_s1 = int_to_ptr.vmem [resolvable:$false] %s2003_s1 }
  0x7c   : > { %p2001_p7 = pnand %p1999_p2, %p2995_p0  ;;  %s2005_s9 = scalar_lea.vmem %s2004_s1, 256 }
  0x7d   : > { %p2006_p6 = scmp.lt.s32.totalorder %s508_s11, %s2004_s1  ;;  %p2007_p5 = scmp.lt.s32.totalorder %s2005_s9, %s1998_s25 }
  0x7e   : > { %p2002_p10 = pneg %p2001_p7 }
  0x7f   : > { %p2008_p1 = por %p2007_p5, %p2006_p6 }
  0x81   : > { %p2009_p3 = pnand %p2008_p1, %p2002_p10 }
  0x83   : > { %2012 = shalt.err (!%p2009_p3)
}
  0x84   : > { %s3054_s0 = scalar_lea.hbm %s3050_s4, %s2623_s7  ;;  %s524_s24 = scalar_lea.vmem [#allocation13], %s2620_s28 }
  0x85   : > { %1755 = dma.hbm_to_vmem [thread:$0]  (!%p2599_p13), %s3054_s0, 128, %s508_s11, %s2585_s2  }
  0x86   : > { %s531_s5 = sshll.u32 %s524_s24, 4  ;;  %s2333_s17 = smov [#allocation10]   ;;  %s532_s5 = int_to_ptr.vmem [resolvable:$true] %s531_s5 }
  0x87   : > { %s442_s1 = sshll.u32 %s2333_s17, 4  ;;  %s2026_s25 = scalar_lea.vmem %s532_s5, 128  ;;  %s443_s1 = int_to_ptr.vmem [resolvable:$true] %s442_s1 }
  0x88   : > { %p2027_p12 = scmp.ne.s32.totalorder %s532_s5, %s2026_s25  ;;  %s2334_s9 = smov [#allocation13]  }
  0x89   : > { %s2031_s26 = sshll.u32 %s2334_s9, 4  ;;  %s2032_s26 = int_to_ptr.vmem [resolvable:$false] %s2031_s26 }
  0x8a   : > { %p2029_p2 = pnand %p2027_p12, %p2995_p0  ;;  %s2033_s19 = scalar_lea.vmem %s2032_s26, 256 }
  0x8b   : > { %p2034_p10 = scmp.lt.s32.totalorder %s532_s5, %s2032_s26  ;;  %p2035_p6 = scmp.lt.s32.totalorder %s2033_s19, %s2026_s25 }
  0x8c   : > { %p2030_p7 = pneg %p2029_p2 }
  0x8d   : > { %p2036_p5 = por %p2035_p6, %p2034_p10 }
  0x8f   : > { %p2037_p1 = pnand %p2036_p5, %p2030_p7 }
  0x91   : > { %2040 = shalt.err (!%p2037_p1)
}
  0x92   : > { %s3055_s0 = scalar_lea.hbm %s3051_s6, %s2623_s7  ;;  %s2052_s24 = scalar_lea.vmem %s443_s1, 16 }
  0x93   : > { %1758 = dma.hbm_to_vmem [thread:$0]  (!%p2599_p13), %s3055_s0, 128, %s532_s5, %s2609_s29  }
  0x94   : > { %p2053_p3 = scmp.ne.s32.totalorder %s443_s1, %s2052_s24  ;;  %p3056_p12 = pneg %p2513_p11 }
  0x95   : > { %s2059_s26 = scalar_lea.vmem %s443_s1, 32  ;;  %p2060_p7 = scmp.lt.s32.totalorder %s443_s1, %s443_s1 }
  0x96   : > { %p2055_p2 = pnand %p2053_p3, %p3056_p12  ;;  %p2061_p10 = scmp.lt.s32.totalorder %s2059_s26, %s2052_s24 }
  0x98   : > { %p2056_p0 = pneg %p2055_p2  ;;  %p2062_p6 = por %p2061_p10, %p2060_p7 }
  0x9a   : > { %p2063_p5 = pnand %p2062_p6, %p2056_p0 }
  0x9c   : > { %2066 = shalt.err (!%p2063_p5)
}
  0x9d   : > { %s3057_s3 = sld [smem:[#allocation49_spill]]  ;;  %s548_s11 = scalar_lea.vmem [#allocation14], %s2620_s28 }
  0x9e   : > { %s3058_s8 = sld [smem:[#allocation54_spill]]  ;;  %s555_s21 = sshll.u32 %s548_s11, 4  ;;  %s556_s21 = int_to_ptr.vmem [resolvable:$true] %s555_s21 }
  0x9f   : > { %s2080_s0 = scalar_lea.vmem %s556_s21, 128  ;;  %p3059_p0 = pneg %p2599_p13 }
  0xa0   : > { %p2081_p1 = scmp.ne.s32.totalorder %s556_s21, %s2080_s0  ;;  %s2335_s18 = smov [#allocation14]  }
  0xa1   : > { %s2085_s24 = sshll.u32 %s2335_s18, 4  ;;  %s2086_s24 = int_to_ptr.vmem [resolvable:$false] %s2085_s24 }
  0xa2   : > { %p2083_p3 = pnand %p2081_p1, %p3059_p0  ;;  %s2087_s26 = scalar_lea.vmem %s2086_s24, 256 }
  0xa3   : > { %1745 = dma.hbm_to_vmem [thread:$0]  (!%p2513_p11), %s3057_s3, 16, %s443_s1, [#allocation11]  }
  0xa4   : > { %s553_s19 = scalar_lea.hbm %s3058_s8, %s2623_s7  ;;  %p2084_p12 = pneg %p2083_p3 }
  0xa5   : > { %p2088_p2 = scmp.lt.s32.totalorder %s556_s21, %s2086_s24  ;;  %p2089_p7 = scmp.lt.s32.totalorder %s2087_s26, %s2080_s0 }
  0xa7   : > { %p2090_p11 = por %p2089_p7, %p2088_p2 }
  0xa9   : > { %p2091_p10 = pnand %p2090_p11, %p2084_p12 }
  0xab   : > { %2094 = shalt.err (!%p2091_p10)
}
  0xac   : > { %1761 = dma.hbm_to_vmem [thread:$0]  (!%p2599_p13), %s553_s19, 128, %s556_s21, %s2585_s2  }
  0xad   : > { %s577_s25 = scalar_lea.hbm %s2958_s10, %s2623_s7  ;;  %s572_s5 = scalar_lea.vmem [#allocation15], %s2620_s28 }
  0xae   : > { %s579_s9 = sshll.u32 %s572_s5, 4  ;;  %p3060_p5 = pmov %p3059_p0  ;;  %s580_s9 = int_to_ptr.vmem [resolvable:$true] %s579_s9 }
  0xaf   : > { %s2108_s11 = scalar_lea.vmem %s580_s9, 128  ;;  %s2336_s0 = smov [#allocation15]  }
  0xb0   : > { %p2109_p6 = scmp.ne.s32.totalorder %s580_s9, %s2108_s11  ;;  %s2113_s18 = sshll.u32 %s2336_s0, 4  ;;  %s2114_s18 = int_to_ptr.vmem [resolvable:$false] %s2113_s18 }
  0xb1   : > { %s2115_s24 = scalar_lea.vmem %s2114_s18, 256  ;;  %p2116_p3 = scmp.lt.s32.totalorder %s580_s9, %s2114_s18 }
  0xb2   : > { %p2111_p1 = pnand %p2109_p6, %p3060_p5  ;;  %p2117_p12 = scmp.lt.s32.totalorder %s2115_s24, %s2108_s11 }
  0xb4   : > { %p2112_p0 = pneg %p2111_p1  ;;  %p2118_p2 = por %p2117_p12, %p2116_p3 }
  0xb6   : > { %p2119_p7 = pnand %p2118_p2, %p2112_p0 }
  0xb8   : > { %2122 = shalt.err (!%p2119_p7)
}
  0xb9   : > { %1764 = dma.hbm_to_vmem [thread:$0]  (!%p2599_p13), %s577_s25, 128, %s580_s9, %s2609_s29  }
  0xba   : > { %588 = sbr.rel (%p2505_p9) target bundleno = 1716 (0x6b4), region = 68  ;;  %s3061_s2 = sld [smem:[#allocation38_spill]] (!%p2505_p9) }
  0xbb   : > { %s3062_s28 = sld [smem:[#allocation33_spill]] (!%p2505_p9) }
  0xc0   : > { %s590_s19 = sand.u32 1, %s3061_s2  }
  0xc1   : > { %s2717_s21 = sand.u32 1, %s3062_s28   ;;  %s591_s1 = scalar_lea.sflag [#allocation5], %s590_s19 }
  0xc2   : > { %s2996_s26 = sshll.u32 %s2717_s21, 3 }
  0xc3   : > { %s2722_s17 = scalar_lea.vmem [#allocation4], %s2996_s26 }
  0xc4   : > { %2232 = dma.done.wait (%p2549_p8), %s591_s1, 128  }
  0xc5   : > { %2234 = vsyncadd (%p2549_p8), %s591_s1, 4294967168  ;;  %s1627_s12 = sshll.u32 %s2717_s21, 4  ;;  %s600_s14 = scalar_lea.sflag [#allocation8], %s590_s19 }
  0xc6   : > { %s2729_s29 = scalar_lea.vmem [#allocation7], %s1627_s12 }
  0xc7   : > { %2236 = dma.done.wait (%p2549_p8), %s600_s14, 256  }
  0xc8   : > { %2238 = vsyncadd (%p2549_p8), %s600_s14, 4294967040  ;;  %p3064_p9 = scmp.eq.s32.totalorder %s3061_s2, 0 }
  0xca   : > { %2240 = dma.done.wait (%p3064_p9), [#allocation8], 16   ;;  %p3065_p13 = pmov %p3064_p9 }
  0xcb   : > { %p3066_p11 = pmov %p3064_p9 }
  0xcc   : > { %2242 = vsyncadd (%p3065_p13), [#allocation8], 4294967280 }
  0xcd   : > { %2244 = dma.done.wait (%p3066_p11), [#allocation11], 16   ;;  %p3067_p10 = pmov %p3064_p9 }
  0xce   : > { %s3068_s25 = sld [smem:[#allocation31_spill]] }
  0xcf   : > { %2246 = vsyncadd (%p3067_p10), [#allocation11], 4294967280  ;;  %s3069_s5 = sld [smem:[#allocation39_spill]] }
  0xd4   : > { %s618_s9 = sand.u32 1, %s3068_s25  }
  0xd5   : > { %s2744_s11 = sshll.u32 %s618_s9, 3  ;;  %p3070_p8 = scmp.ne.s32.totalorder %s3069_s5, 0 }
  0xd7   : > { %2248 = dma.done.wait (%p3070_p8), %s591_s1, 128  }
  0xd8   : > { %2250 = vsyncadd (%p3070_p8), %s591_s1, 4294967168 }
  0xd9   : > { %2252 = dma.done.wait (%p3070_p8), %s600_s14, 128  }
  0xda   : > { %2254 = vsyncadd (%p3070_p8), %s600_s14, 4294967168 }
  0xdb   : > { %2256 = dma.done.wait (%p3070_p8), %s591_s1, 128  }
  0xdc   : > { %2258 = vsyncadd (%p3070_p8), %s591_s1, 4294967168 }
  0xdd   : > { %2260 = dma.done.wait (%p3070_p8), %s600_s14, 128  }
  0xde   : > { %2262 = vsyncadd (%p3070_p8), %s600_s14, 4294967168  ;;  %s3071_s28 = sld [smem:[#allocation30_spill]]  ;;  %s3076_s4 = sshll.u32 %s2717_s21, 3 }
  0xdf   : > { %s3072_s7 = sld [smem:[#allocation34_spill]]  ;;  %s2789_s6 = scalar_lea.vmem [#allocation16], %s3076_s4 }
  0xe0   : > { %s3073_s2 = sld [smem:[#allocation51_spill]] }
  0xe1   : > { %s3074_s0 = sld [smem:[#allocation53_spill]] }
  0xe4   : > { %s2997_s19 = sand.u32 1, %s3071_s28   ;;  %s3075_s28 = sld [smem:[#allocation55_spill]] }
  0xe5   : > { %s2769_s12 = sshll.u32 %s2997_s19, 3  ;;  %p729_p6 = scmp.lt.s32.totalorder %s3072_s7, 3 }
  0xe6   : > { %s728_s8 = scalar_lea.vmem [#allocation17], %s2769_s12  ;;  %p1636_p5 = scmp.ne.s32.totalorder %s3072_s7, 0 }
  0xe7   : > { %s2773_s1 = scalar_select %p729_p6, %s3072_s7, 3 }
  0xe8   : > { %741 = sbr.rel (%p1636_p5) target bundleno = 547 (0x223), region = 104 }
  0xe9   : > { %s731_s14 = scalar_lea.vmem %s3073_s2, %s2773_s1  ;;  %s734_s18 = scalar_lea.vmem %s3074_s0, %s2773_s1 }
  0xea   : > { %s737_s19 = scalar_lea.vmem %s3075_s28, %s2773_s1 }
  0xed   : > { %v742_v0 = vld [vmem:[%s2722_s17] sm:$0xff]  ;;  %vm743_vm0 = vcmask 261120   ;;  %v2337_v2 = vmov 0.0   ;;  %v1637_v12 = vld [vmem:[#allocation9] ss:$0 sm:$0xff] }
  0xee   : > { %v744_v1 = vsel %vm743_vm0, %v742_v0, 0.0  ;;  %775 = vst.msk [vmem:[#allocation3] sm:$0xff] %vm743_vm0, %v2337_v2  ;;  %v1638_v14 = vld [vmem:[#allocation10] ss:$0 sm:$0xff] }
  0xef   : > { %745 = vadd.xlane.f32.xlu0 %v744_v1 }
 0x178   : > { %v746_v3 = vpop.xlane.xlu0 %745 }
 0x179   : > { %v748_v4 = vmul.f32 0.03125, %v746_v3 }
 0x17b   : > { %v749_v5 = vsub.f32 %v742_v0, %v748_v4 }
 0x17d   : > { %v750_v6 = vmul.f32 %v749_v5, %v749_v5 }
 0x17f   : > { %v751_v7 = vsel %vm743_vm0, %v750_v6, 0.0 }
 0x180   : > { %752 = vadd.xlane.f32.xlu0 %v751_v7 }
 0x209   : > { %v753_v8 = vpop.xlane.xlu0 %752 }
 0x20a   : > { %v754_v9 = vmul.f32 0.03125, %v753_v8 }
 0x20c   : > { %v755_v10 = vadd.f32 1e-05, %v754_v9 }
 0x20e   : > { %1897 = vrsqrt.f32 %v755_v10 }
 0x21b   : > { %v1898_v11 = vpop.eup %1897 }
 0x21c   : > { %v757_v13 = vmul.f32 %v1898_v11, %v749_v5 }
 0x21e   : > { %v765_v15 = vmul.f32 %v1637_v12, %v757_v13 }
 0x220   : > { %v773_v16 = vadd.f32 %v1638_v14, %v765_v15 }
 0x222   : > { %774 = vst.msk [vmem:[#allocation2] sm:$0xff] %vm743_vm0, %v773_v16 }
 0x223 PF: > { %vm787_vm1 = vcmask 261120   ;;  %s3077_s3 = scalar_lea.vmem [#allocation13], %s2744_s11  ;;  %v777_v18 = vld [vmem:[%s2729_s29] sm:$0xff]  ;;  %s3078_s4 = scalar_lea.vmem [#allocation12], %s2744_s11  ;;  %v778_v20 = vld [vmem:[%s2729_s29 + $0x8] sm:$0xff]  ;;  %v2338_v21 = vmov 0.0  }
 0x224   : > { %v864_v17 = vld [vmem:[%s3077_s3] sm:$0xff]  ;;  %1688 = vmatprep.mubr.msk.f32.mxu1 %vm787_vm1, %v777_v18  ;;  %v779_v19 = vld [vmem:[%s3078_s4] sm:$0xff]  ;;  %1681 = vmatprep.subr.mxu0 %v2338_v21  ;;  %vm2339_vm2 = vmmov 0   ;;  %vm1042_vm3 = vcmask 64512   ;;  %vm1123_vm4 = vcmask 130048  }
 0x225   : > { %1686 = vmatprep.subr.msk.mxu1 %vm787_vm1, %v864_v17  ;;  %1682 = vmatpush3.xpose.msk.msra.mxu0 %vm787_vm1, %v779_v19  ;;  %v1642_v23 = vld [vmem:[%s734_s18] ss:$0 sm:$0xff]  ;;  %s3081_s18 = scalar_lea.vmem [#allocation14], %s2744_s11  ;;  %v1209_v53 = vld [vmem:[#allocation3] sm:$0xff] }
 0x226   : > { %1687 = vmatpush3.xpose.msk.msra.mxu1 %vm787_vm1, %v864_v17  ;;  %1683 = vmatprep.mubr.msk.f32.mxu0 %vm2339_vm2, %v2338_v21  ;;  %v1639_v28 = vld [vmem:[%s731_s14] ss:$0 sm:$0xff]  ;;  %v956_v32 = vld [vmem:[%s3081_s18] sm:$0xff]  ;;  %s3083_s14 = scalar_lea.vmem [#allocation15], %s2744_s11  ;;  %s3084_s11 = sld [smem:[#allocation34_spill]] }
 0x227   : > { %1696 = vmatprep.subr.mxu1 %v2338_v21  ;;  %1691 = vmatprep.subr.msk.mxu0 %vm787_vm1, %v956_v32  ;;  %v1646_v43 = vld [vmem:[%s737_s19] ss:$0 sm:$0xff] }
 0x228   : > { %v1210_v50 = vld [vmem:[%s3083_s14] sm:$0xff] }
 0x229   : > { %v776_v22 = vld [vmem:[#allocation2] sm:$0xff]  ;;  %1689 = vmatmul.mubr.msk.f32.vlgmr.msra.gmra.mxu1 %vm787_vm1, %v778_v20 }
 0x22a   : > { %1684 = vmatmul.mubr.msk.f32.vlgmr.msra.gmra.mxu0 %vm787_vm1, %v776_v22  ;;  %1700 = vmatprep.mubr.msk.f32.mxu1 %vm2339_vm2, %v2338_v21 }
 0x22b   : > { %1693 = vmatprep.mubr.msk.f32.mxu0 %vm787_vm1, %v777_v18  ;;  %1692 = vmatpush3.xpose.msk.msra.mxu0 %vm787_vm1, %v956_v32 }
 0x22c   : > { %1703 = vmatprep.subr.mxu0 %v2338_v21  ;;  %p1655_p1 = scmp.ne.s32.totalorder %s3084_s11, 3 }
 0x22d   : > { %s3085_s5 = sld [smem:[#allocation56_spill]] (!%p1655_p1) }
 0x22e   : > { %1694 = vmatmul.mubr.msk.f32.vlgmr.msra.gmra.mxu0 %vm787_vm1, %v778_v20 }
 0x22f   : > { %1707 = vmatprep.mubr.msk.f32.mxu0 %vm2339_vm2, %v2338_v21 }
 0x2e9   : > { %v1690_v24 = vpop.f32.mrf.mxu1 }
 0x2ea   : > { %v953_v25 = vadd.f32 %v1690_v24, %v1642_v23  ;;  %v860_v26 = vpop.f32.mrf.mxu0 }
 0x2eb   : > { %v947_v27 = vpop.f32.mrf.mxu1  ;;  %v861_v31 = vadd.f32 %v1639_v28, %v860_v26 }
 0x2ec   : > { %1697 = vmatpush3.xpose.msk.msra.mxu1 %vm1042_vm3, %v953_v25  ;;  %v1685_v29 = vpop.f32.mrf.mxu0  ;;  %v948_v30 = vadd.f32 %v1642_v23, %v947_v27 }
 0x2ed   : > { %1698 = vmatprep.subr.mxu1 %v2338_v21 }
 0x2ee   : > { %v1695_v42 = vpop.f32.mrf.mxu0 }
 0x2ef   : > { %v1039_v44 = vadd.f32 %v1695_v42, %v1646_v43 }
 0x2f0   : > { %1699 = vmatpush3.xpose.msk.msra.mxu1 %vm1042_vm3, %v948_v30  ;;  %v1033_v45 = vpop.f32.mrf.mxu0 }
 0x2f1   : > { %v1034_v46 = vadd.f32 %v1646_v43, %v1033_v45  ;;  %1704 = vmatpush3.msra.mxu0 %v1039_v44 }
 0x2f2   : > { %1705 = vmatprep.subr.mxu0 %v2338_v21 }
 0x2f3   : > { %1701 = vmatmul.mubr.msk.f32.vlgmr.msra.gmra.mxu1 %vm1042_vm3, %v861_v31  ;;  %1706 = vmatpush3.msra.mxu0 %v1034_v46 }
 0x2f4   : > { %1710 = vmatprep.subr.mxu0 %v2338_v21 }
 0x3b3   : > { %v1118_v33 = vpop.f32.mrf.mxu1 }
 0x3b4   : > { %v1122_v34 = vmul.f32 0.35355338, %v1118_v33 }
 0x3b5   : > { %v1702_v35 = vpop.f32.mrf.mxu1 }
 0x3b6   : > { %v1124_v36 = vsel %vm1123_vm4, %v1122_v34, -inf }
 0x3b7   : > { %1125 = vmax.xlane.f32.xlu0 %v1124_v36 }
 0x440   : > { %v1126_v37 = vpop.xlane.xlu0 %1125 }
 0x441   : > { %v1127_v38 = vsub.f32 %v1122_v34, %v1126_v37 }
 0x443   : > { %v1128_v39 = vmul.f32 1.442695, %v1127_v38 }
 0x445   : > { %1899 = vpow2.f32 %v1128_v39 }
 0x452   : > { %v1900_v40 = vpop.eup %1899 }
 0x453   : > { %v1130_v41 = vsel %vm1123_vm4, %v1900_v40, 0.0 }
 0x454   : > { %1131 = vadd.xlane.f32.xlu0 %v1130_v41 }
 0x4dd   : > { %v1132_v47 = vpop.xlane.xlu0 %1131 }
 0x4de   : > { %1901 = vrcp.f32 %v1132_v47 }
 0x4eb   : > { %v1902_v48 = vpop.eup %1901 }
 0x4ec   : > { %v1134_v49 = vmul.f32 %v1902_v48, %v1900_v40 }
 0x4ee   : > { %1135 = vst.msk [vmem:[%s728_s8] sm:$0xff] %vm1123_vm4, %v1134_v49  ;;  %1708 = vmatmul.mubr.msk.f32.vlgmr.msra.gmra.mxu0 %vm1123_vm4, %v1134_v49 }
 0x4ef   : > { %1711 = vmatpush3.msra.mxu0 %v1210_v50  ;;  %1712 = vmatprep.mubr.msk.f32.mxu0 %vm2339_vm2, %v2338_v21 }
 0x5ae   : > { %v1205_v51 = vpop.f32.mrf.mxu0 }
 0x5af   : > { %1713 = vmatmul.mubr.msk.f32.vlgmr.msra.gmra.mxu0 %vm1042_vm3, %v1205_v51 }
 0x5b0   : > { %v1709_v52 = vpop.f32.mrf.mxu0 }
 0x66e   : > { %1289 = sbr.rel (%p1655_p1) target bundleno = 1661 (0x67d), region = 108 }
 0x66f   : > { %v1280_v54 = vpop.f32.mrf.mxu0 }
 0x670   : > { %v1284_v55 = vadd.f32 %v1280_v54, %v1209_v53 }
 0x671   : > { %v1714_v56 = vpop.f32.mrf.mxu0 }
 0x672   : > { %1285 = vst.msk [vmem:[#allocation3] sm:$0xff] %vm787_vm1, %v1284_v55 }
 0x673   : > { %v1656_v58 = vld [vmem:[%s3085_s5] ss:$0 sm:$0xff] }
 0x679   : > { %v1290_v57 = vld [vmem:[#allocation3] sm:$0xff] }
 0x67a   : > { %v1298_v59 = vadd.f32 %v1656_v58, %v1290_v57 }
 0x67c   : > { %1299 = vst.msk [vmem:[%s2789_s6] sm:$0xff] %vm787_vm1, %v1298_v59 }
 0x67d PF: > { %s3086_s28 = sld [smem:[#allocation35_spill]]  ;;  %s1320_s2 = sshll.u32 %s2789_s6, 4  ;;  %s1321_s2 = int_to_ptr.vmem [resolvable:$true] %s1320_s2 }
 0x67e   : > { %s3087_s3 = sld [smem:[#allocation41_spill]]  ;;  %s1301_s18 = scalar_lea.sflag [#allocation6], %s2717_s21 }
 0x67f   : > { %s3088_s29 = sld [smem:[#allocation57_spill]]  ;;  %s2123_s7 = scalar_lea.vmem %s1321_s2, 128 }
 0x680   : > { %p2124_p0 = scmp.ne.s32.totalorder %s1321_s2, %s2123_s7  ;;  %s2340_s25 = smov [#allocation16]  }
 0x681   : > { %s2127_s9 = sshll.u32 %s2340_s25, 4  ;;  %s2128_s9 = int_to_ptr.vmem [resolvable:$false] %s2127_s9 }
 0x682   : > { %s2129_s14 = scalar_lea.vmem %s2128_s9, 256  ;;  %p2130_p7 = scmp.lt.s32.totalorder %s1321_s2, %s2128_s9 }
 0x683   : > { %s1659_s4 = sshll.u32 %s3086_s28, 7  ;;  %p2131_p9 = scmp.lt.s32.totalorder %s2129_s14, %s2123_s7 }
 0x684   : > { %p3090_p3 = scmp.ne.s32.totalorder %s3087_s3, 0 }
 0x685   : > { %s3089_s0 = smov %s3088_s29  ;;  %s1318_s24 = scalar_lea.hbm %s3088_s29, %s1659_s4 }
 0x686   : > { %p2125_p12 = pnand %p2124_p0, %p3090_p3  ;;  %p2132_p13 = por %p2131_p9, %p2130_p7 }
 0x688   : > { %p2126_p2 = pneg %p2125_p12 }
 0x68a   : > { %p2133_p11 = pnand %p2132_p13, %p2126_p2 }
 0x68c   : > { %2136 = shalt.err (!%p2133_p11)
}
 0x68d   : > { %s2137_s11 = scalar_lea.hbm %s1318_s24, 128  ;;  %s2141_s19 = scalar_lea.hbm %s3089_s0, 256 }
 0x68e   : > { %p2138_p10 = scmp.ne.s32.totalorder %s1318_s24, %s2137_s11  ;;  %p2142_p5 = scmp.lt.s32.totalorder %s1318_s24, %s3089_s0 }
 0x68f   : > { %p2143_p1 = scmp.lt.s32.totalorder %s2141_s19, %s2137_s11 }
 0x690   : > { %p2139_p8 = pnand %p2138_p10, %p3090_p3 }
 0x691   : > { %p2144_p0 = por %p2143_p1, %p2142_p5 }
 0x692   : > { %p2140_p6 = pneg %p2139_p8 }
 0x694   : > { %p2145_p12 = pnand %p2144_p0, %p2140_p6 }
 0x696   : > { %2148 = shalt.err (!%p2145_p12)
}
 0x697   : > { %s3091_s4 = sld [smem:[#allocation34_spill]]  ;;  %s1660_s29 = sshll.u32 %s3086_s28, 2 }
 0x698   : > { %s3092_s26 = sld [smem:[#allocation30_spill]]  ;;  %s1336_s7 = sshll.u32 %s728_s8, 4  ;;  %s1337_s7 = int_to_ptr.vmem [resolvable:$true] %s1336_s7 }
 0x699   : > { %s3093_s17 = sld [smem:[#allocation40_spill]]  ;;  %s2149_s5 = scalar_lea.vmem %s1337_s7, 128 }
 0x69a   : > { %1735 = dma.vmem_to_hbm [thread:$0]  (%p3090_p3), %s1321_s2, 128, %s1318_s24, %s1301_s18  }
 0x69b   : > { %s3094_s11 = sld [smem:[#allocation58_spill]]  ;;  %p2150_p2 = scmp.ne.s32.totalorder %s1337_s7, %s2149_s5 }
 0x69c   : > { %s2341_s3 = smov [#allocation17]  }
 0x69d   : > { %s1332_s25 = sadd.s32 %s3091_s4, %s1660_s29  ;;  %s2153_s0 = sshll.u32 %s2341_s3, 4  ;;  %s2154_s0 = int_to_ptr.vmem [resolvable:$false] %s2153_s0 }
 0x69e   : > { %s1661_s9 = sshll.u32 %s1332_s25, 7  ;;  %s3095_s19 = sand.u32 1, %s3092_s26  }
 0x69f   : > { %s1306_s1 = scalar_lea.sflag [#allocation18], %s3095_s19  ;;  %p3096_p7 = scmp.ne.s32.totalorder %s3093_s17, 0 }
 0x6a0   : > { %s2155_s28 = scalar_lea.vmem %s2154_s0, 256  ;;  %p2156_p3 = scmp.lt.s32.totalorder %s1337_s7, %s2154_s0 }
 0x6a1   : > { %s1334_s21 = scalar_lea.hbm %s3094_s11, %s1661_s9  ;;  %p2151_p9 = pnand %p2150_p2, %p3096_p7 }
 0x6a2   : > { %p2157_p11 = scmp.lt.s32.totalorder %s2155_s28, %s2149_s5 }
 0x6a3   : > { %p2152_p13 = pneg %p2151_p9 }
 0x6a4   : > { %p2158_p10 = por %p2157_p11, %p2156_p3 }
 0x6a6   : > { %p2159_p8 = pnand %p2158_p10, %p2152_p13 }
 0x6a8   : > { %2162 = shalt.err (!%p2159_p8)
}
 0x6a9   : > { %s2163_s8 = scalar_lea.hbm %s1334_s21, 128  ;;  %s2167_s2 = scalar_lea.hbm %s3094_s11, 1024 }
 0x6aa   : > { %p2164_p6 = scmp.ne.s32.totalorder %s1334_s21, %s2163_s8  ;;  %p2168_p0 = scmp.lt.s32.totalorder %s1334_s21, %s3094_s11 }
 0x6ab   : > { %p2169_p12 = scmp.lt.s32.totalorder %s2167_s2, %s2163_s8 }
 0x6ac   : > { %p2165_p5 = pnand %p2164_p6, %p3096_p7 }
 0x6ad   : > { %p2170_p2 = por %p2169_p12, %p2168_p0 }
 0x6ae   : > { %p2166_p1 = pneg %p2165_p5 }
 0x6b0   : > { %p2171_p9 = pnand %p2170_p2, %p2166_p1 }
 0x6b2   : > { %2174 = shalt.err (!%p2171_p9)
}
 0x6b3   : > { %1736 = dma.vmem_to_hbm [thread:$0]  (%p3096_p7), %s1337_s7, 128, %s1334_s21, %s1306_s1  }
 0x6b4 PF: > { %s3097_s0 = sld [smem:[#allocation37_spill]] }
 0x6b5   : > { %s3098_s26 = sld [smem:[#allocation32_spill]] }
 0x6ba   : > { %p1777_p13 = scmp.ge.s32.totalorder %s3097_s0, 2 }
 0x6bb   : > { %s1348_s25 = sand.u32 1, %s3098_s26  }
 0x6bc   : > { %p1766_p3 = pnand %p1777_p13, %p2559_p4  ;;  %s1349_s9 = scalar_lea.sflag [#allocation6], %s1348_s25 }
 0x6be   : > { %p1767_p11 = pneg %p1766_p3 }
 0x6c0   : > { %2264 = dma.done.wait (%p1767_p11), %s1349_s9, 128  }
 0x6c1   : > { %2266 = vsyncadd (%p1767_p11), %s1349_s9, 4294967168  ;;  %s3100_s14 = sld [smem:[#allocation29_spill]] }
 0x6c2   : > { %s3101_s6 = sld [smem:[#allocation44_spill]] }
 0x6c7   : > { %s1357_s19 = sand.u32 1, %s3100_s14  }
 0x6c8   : > { %p3102_p10 = scmp.ne.s32.totalorder %s3101_s6, 0  ;;  %s1358_s17 = scalar_lea.sflag [#allocation18], %s1357_s19 }
 0x6ca   : > { %p1769_p8 = pnand %p1777_p13, %p3102_p10 }
 0x6cc   : > { %p1770_p6 = pneg %p1769_p8 }
 0x6ce   : > { %2268 = dma.done.wait (%p1770_p6), %s1358_s17, 128  }
 0x6cf   : > { %2270 = vsyncadd (%p1770_p6), %s1358_s17, 4294967168  ;;  %s37_s21 = sadd.s32 1, %s3097_s0   ;;  %s3104_s25 = sld [smem:[#allocation30_spill]] }
 0x6d0   : > { %p2901_p7 = scmp.ge.s32.totalorder %s37_s21, 10   ;;  %s3105_s28 = sld [smem:[#allocation31_spill]] }
 0x6d1   : > { %s3106_s14 = sld [smem:[#allocation33_spill]]  ;;  %s3109_s26 = smov %s2281_s27 }
 0x6d2   : > { %s3107_s17 = sld [smem:[#allocation36_spill]]  ;;  %s3110_s27 = smov %s2656_s22 }
 0x6d3   : > { %s3108_s19 = sld [smem:[#allocation45_spill]]  ;;  %s3111_s29 = smov %s2293_s30 }
 0x6d4   : > { %s3112_s30 = smov %s2640_s15  ;;  %s3113_s15 = smov %s2305_s16 }
 0x6d5   : > { %s3114_s16 = smov %s2651_s23  ;;  %s3115_s18 = smov %s2321_s20 }
 0x6d6   : > { %s3116_s20 = smov %s3122_s13  ;;  %36 = sbr.rel (!%p2901_p7) target bundleno = 29 (0x1d), region = 212 }
 0x6db   :  { %1363 = vsyncpa [#allocation5], 1 }
 0x6dc   :  { %1365 = vsyncpa [#allocation5 + $0x1], 1 }
 0x6dd   :  { %1366 = vsyncpa [#allocation8], 1 }
 0x6de   :  { %1368 = vsyncpa [#allocation8 + $0x1], 1 }
 0x6df   :  { %1369 = vsyncpa [#allocation11], 1 }
 0x6e0   :  { %1370 = vsyncpa [#allocation6], 1 }
 0x6e1   :  { %1372 = vsyncpa [#allocation6 + $0x1], 1 }
 0x6e2   :  { %1373 = vsyncpa [#allocation18], 1 }
 0x6e3   :  { %1375 = vsyncpa [#allocation18 + $0x1], 1 }

</bundles_post_ra>
